<compile_context>
chip_gen: v6e
topology: v6e:2x2x1
jax: 0.10.0
libtpu: 0.0.40
codegen_flags: <defaults>
</compile_context>

<pallas_src>
import numpy as np
import jax
import jax.numpy as jnp
from jax.experimental import pallas as pl
from jax.experimental.pallas import tpu as pltpu


def _dft_matrices(n, dtype):
    """Orthonormal DFT matrix F[j,k] = exp(-2*pi*i*j*k/n)/sqrt(n), as (re, im)."""
    idx = np.arange(n)
    ang = -2.0 * np.pi * np.outer(idx, idx) / n
    scale = 1.0 / np.sqrt(n)
    re = jnp.asarray((np.cos(ang) * scale).astype(np.float32)).astype(dtype)
    im = jnp.asarray((np.sin(ang) * scale).astype(np.float32)).astype(dtype)
    return re, im


def _make_kernel(bt, h, w, compute_dtype, use_gauss, same_hw):
    f32 = jnp.float32
    cdt = compute_dtype

    def mm(a, b):
        # MXU matmul in compute_dtype (bf16 fast path), f32 accumulation.
        return jnp.dot(a, b, preferred_element_type=f32)

    def kernel(*refs):
        if same_hw:
            fr_ref, fi_ref, im_ref, k0_ref, mask_ref, out_ref = refs
            fhr = fwr = fr_ref[...]
            fhi = fwi = fi_ref[...]
        else:
            (fhr_ref, fhi_ref, fwr_ref, fwi_ref,
             im_ref, k0_ref, mask_ref, out_ref) = refs
            fhr, fhi = fhr_ref[...], fhi_ref[...]
            fwr, fwi = fwr_ref[...], fwi_ref[...]

        # Conjugate (inverse-path) imaginary parts, built once per grid step.
        fhi_n = -fhi
        fwi_n = fhi_n if same_hw else -fwi

        if use_gauss:
            # Constant Karatsuba combos (forward uses F, inverse uses conj(F)).
            fhs_f = fhr + fhi
            fhs_b = fhr - fhi
            fws_f = fhs_f if same_hw else fwr + fwi
            fws_b = fhs_b if same_hw else fwr - fwi
        else:
            fhs_f = fhs_b = fws_f = fws_b = None

        def cmm_right(ar, ai, br, bi, bs):
            """(ar + i*ai) @ (br + i*bi); constants on the right; f32 accum."""
            ar_c = ar.astype(cdt)
            ai_c = ai.astype(cdt)
            if use_gauss:
                t1 = mm(ar_c, br)
                t2 = mm(ai_c, bi)
                t3 = mm((ar + ai).astype(cdt), bs)
                return t1 - t2, t3 - t1 - t2
            return (mm(ar_c, br) - mm(ai_c, bi),
                    mm(ar_c, bi) + mm(ai_c, br))

        def cmm_left(br, bi, bs, ar, ai):
            """(br + i*bi) @ (ar + i*ai); constants on the left; f32 accum."""
            ar_c = ar.astype(cdt)
            ai_c = ai.astype(cdt)
            if use_gauss:
                t1 = mm(br, ar_c)
                t2 = mm(bi, ai_c)
                t3 = mm(bs, (ar + ai).astype(cdt))
                return t1 - t2, t3 - t1 - t2
            return (mm(br, ar_c) - mm(bi, ai_c),
                    mm(br, ai_c) + mm(bi, ar_c))

        # Per-image pipeline, statically unrolled over the block batch.
        # No lane-repacking: every matmul works directly on (h, w) tiles.
        for b in range(bt):
            xr = im_ref[b, 0, :, :]
            xi = im_ref[b, 1, :, :]

            # ---- forward 2-D DFT: K = F_H @ (X @ F_W) ----
            awr, awi = cmm_right(xr, xi, fwr, fwi, fws_f)
            kr, ki = cmm_left(fhr, fhi, fhs_f, awr, awi)

            # ---- data consistency: k_dc = (1 - m) * k + m * k0  (f32, VPU) ----
            # Lerp form kept (not jnp.where) so soft / weighted masks stay exact.
            m = mask_ref[b, :, :].astype(f32)
            one_m = 1.0 - m
            kdr = one_m * kr + m * k0_ref[b, 0, :, :].astype(f32)
            kdi = one_m * ki + m * k0_ref[b, 1, :, :].astype(f32)

            # ---- inverse 2-D DFT: X' = conj(F_H) @ K_dc @ conj(F_W) ----
            zr, zi = cmm_left(fhr, fhi_n, fhs_b, kdr, kdi)
            our, oui = cmm_right(zr, zi, fwr, fwi_n, fws_b)

            out_ref[b, 0, :, :] = our.astype(out_ref.dtype)
            out_ref[b, 1, :, :] = oui.astype(out_ref.dtype)

    return kernel


def _tpu_info():
    """(vmem_capacity_bytes, tensorcores_per_chip) with conservative fallbacks."""
    vmem = 64 * 1024 * 1024      # v7x per-TensorCore VMEM (most conservative)
    cores = 1
    try:
        info = pltpu.get_tpu_info()
        v = getattr(info, "vmem_capacity_bytes", None)
        if v:
            vmem = int(v)
        for attr in ("num_tensorcores", "tensorcores_per_chip",
                     "num_cores", "cores_per_chip"):
            c = getattr(info, attr, None)
            if c:
                cores = int(c)
                break
    except Exception:
        pass
    return vmem, cores


def _choose_block_b(batch, h, w, budget_bytes, num_cores, mask_itemsize):
    # Double-buffered per-image I/O (im + k0 + out in f32, mask in its dtype)
    # plus an allowance for in-flight f32 temporaries of interleaved images.
    per_image = 2 * (6 * 4 + mask_itemsize) * h * w + 8 * h * w * 4
    bt = max(1, int(budget_bytes) // max(per_image, 1))
    bt = min(bt, batch)
    if num_cores >= 2 and batch >= 2:
        bt = min(bt, batch // 2)     # at least 2 blocks for the 2 TensorCores

    def tiles_ok(b):
        if batch % b != 0:
            return False
        if num_cores >= 2 and batch >= 2 and (batch // b) % 2 != 0:
            return False             # even block count keeps both TCs busy
        return True

    while bt > 1 and not tiles_ok(bt):
        bt -= 1
    return max(bt, 1)


def data_consistency_layer(im, k0, mask, *, block_b=None,
                           matmul_dtype=jnp.bfloat16, use_gauss=None):
    """im, k0: [B, 2, H, W] pseudo-complex; mask: [B, H, W] real (any dtype)."""
    B, C, H, W = im.shape
    assert C == 2 and k0.shape == im.shape and mask.shape == (B, H, W)

    matmul_dtype = np.dtype(matmul_dtype)
    if use_gauss is None:
        # Gauss 3-mult pays off when the MXU is the bottleneck (f32 emulated
        # matmuls); at bf16 the kernel is typically HBM-bound, so the plain
        # 4-mult form (fewer live partials / VPU adds) is preferred.
        use_gauss = (matmul_dtype == np.dtype(np.float32))
    same_hw = (H == W)

    vmem_cap, num_cores = _tpu_info()
    vmem_limit = int(min(vmem_cap, max(vmem_cap * 3 // 4, 32 * 1024 * 1024)))

    # Constant DFT matrices: constant index_map so Pallas never re-fetches them,
    # but the default pipeline still allocates two buffers -> account for 2x.
    fmat_elems = H * H if same_hw else (H * H + W * W)
    fmat_bytes = 2 * 2 * fmat_elems * matmul_dtype.itemsize
    temp_pool = 16 * H * W * 4

    if block_b is None:
        block_b = _choose_block_b(
            B, H, W,
            budget_bytes=vmem_limit - fmat_bytes - temp_pool,
            num_cores=num_cores,
            mask_itemsize=np.dtype(mask.dtype).itemsize)
    assert B % block_b == 0, "block_b must divide the batch"
    n_blocks = B // block_b

    kernel = _make_kernel(block_b, H, W, matmul_dtype, use_gauss, same_hw)

    io_map = lambda i: (i, 0, 0, 0)
    mask_map = lambda i: (i, 0, 0)
    const_map = lambda i: (0, 0)

    if same_hw:
        f_re, f_im = _dft_matrices(H, matmul_dtype)
        const_args = (f_re, f_im)
        const_specs = [pl.BlockSpec((H, H), const_map),
                       pl.BlockSpec((H, H), const_map)]
    else:
        fh_re, fh_im = _dft_matrices(H, matmul_dtype)
        fw_re, fw_im = _dft_matrices(W, matmul_dtype)
        const_args = (fh_re, fh_im, fw_re, fw_im)
        const_specs = [pl.BlockSpec((H, H), const_map),
                       pl.BlockSpec((H, H), const_map),
                       pl.BlockSpec((W, W), const_map),
                       pl.BlockSpec((W, W), const_map)]

    in_specs = const_specs + [
        pl.BlockSpec((block_b, 2, H, W), io_map),
        pl.BlockSpec((block_b, 2, H, W), io_map),
        pl.BlockSpec((block_b, H, W), mask_map),
    ]

    fn = pl.pallas_call(
        kernel,
        out_shape=jax.ShapeDtypeStruct((B, 2, H, W), im.dtype),
        grid_spec=pltpu.PrefetchScalarGridSpec(
            num_scalar_prefetch=0,
            grid=(n_blocks,),
            in_specs=in_specs,
            out_specs=pl.BlockSpec((block_b, 2, H, W), io_map),
        ),
        compiler_params=pltpu.CompilerParams(
            dimension_semantics=("parallel",),
            vmem_limit_bytes=vmem_limit,
        ),
    )
    return fn(*const_args, im, k0, mask)


def _reference(im, k0, mask):
    """Pure-JAX reference (complex FFT path)."""
    x = im[:, 0] + 1j * im[:, 1]
    k0c = k0[:, 0] + 1j * k0[:, 1]
    k = jnp.fft.fft2(x, norm="ortho")
    k_dc = (1.0 - mask) * k + mask * k0c
    out = jnp.fft.ifft2(k_dc, norm="ortho")
    return jnp.stack([out.real, out.imag], axis=1).astype(jnp.float32)


if __name__ == "__main__":
    key = jax.random.PRNGKey(0)
    k1, k2, k3 = jax.random.split(key, 3)

    # Small shapes consistent with the module: [B, C=2, H, W] pseudo-complex.
    B, H, W = 2, 16, 16
    im = jax.random.normal(k1, (B, 2, H, W), dtype=jnp.float32)
    k0 = jax.random.normal(k2, (B, 2, H, W), dtype=jnp.float32)
    mask = (jax.random.uniform(k3, (B, H, W)) > 0.5).astype(jnp.float32)

    ref = _reference(im, k0, mask)

    # 1) f32 matmul path (Gauss): strict semantic check against jnp.fft.
    out_f32 = jax.block_until_ready(
        data_consistency_layer(im, k0, mask, matmul_dtype=jnp.float32))
    np.testing.assert_allclose(np.asarray(out_f32), np.asarray(ref),
                               rtol=2e-3, atol=2e-4)

    # 2) Default bf16 MXU fast path (looser tolerance: bf16 operand rounding).
    out_bf16 = jax.block_until_ready(data_consistency_layer(im, k0, mask))
    err = np.asarray(out_bf16) - np.asarray(ref)
    rel_l2 = float(np.sqrt(np.sum(err * err) / np.sum(np.asarray(ref) ** 2)))
    assert rel_l2 < 3e-2, f"bf16 path relative L2 error too high: {rel_l2}"

    # 3) Multi-image block + non-square (exercises the two-DFT-matrix path).
    B2, H2, W2 = 4, 8, 16
    im2 = jax.random.normal(k1, (B2, 2, H2, W2), dtype=jnp.float32)
    k02 = jax.random.normal(k2, (B2, 2, H2, W2), dtype=jnp.float32)
    mask2 = (jax.random.uniform(k3, (B2, H2, W2)) > 0.5).astype(jnp.float32)
    out2 = jax.block_until_ready(
        data_consistency_layer(im2, k02, mask2, block_b=2,
                               matmul_dtype=jnp.float32))
    np.testing.assert_allclose(np.asarray(out2),
                               np.asarray(_reference(im2, k02, mask2)),
                               rtol=2e-3, atol=2e-4)

    print("KERNEL_OK")
</pallas_src>

<mosaic_0001>
module attributes {stable_mosaic.version = 11 : i64} {
  func.func @kernel(%arg0: i32, %arg1: memref<16x16xf32, #tpu.memory_space<vmem>>, %arg2: memref<16x16xf32, #tpu.memory_space<vmem>>, %arg3: memref<2x2x16x16xf32, #tpu.memory_space<vmem>>, %arg4: memref<2x2x16x16xf32, #tpu.memory_space<vmem>>, %arg5: memref<2x16x16xf32, #tpu.memory_space<vmem>>, %arg6: memref<2x2x16x16xf32, #tpu.memory_space<vmem>>) attributes {dimension_semantics = [#tpu.dimension_semantics<parallel>], iteration_bounds = array<i64: 1>, scalar_prefetch = 0 : i64, scratch_operands = 0 : i64, tpu.core_type = #tpu.core_type<tc>, window_params = [{pipeline_mode = #tpu.pipeline_mode<synchronous>, transform_indices = @transform_0, window_bounds = array<i64: 16, 16>}, {pipeline_mode = #tpu.pipeline_mode<synchronous>, transform_indices = @transform_1, window_bounds = array<i64: 16, 16>}, {transform_indices = @transform_2, window_bounds = array<i64: 2, 2, 16, 16>}, {transform_indices = @transform_3, window_bounds = array<i64: 2, 2, 16, 16>}, {transform_indices = @transform_4, window_bounds = array<i64: 2, 16, 16>}, {transform_indices = @transform_5, window_bounds = array<i64: 2, 2, 16, 16>}]} {
    %c0 = arith.constant 0 : index
    %c0_0 = arith.constant 0 : index
    %0 = vector.load %arg1[%c0, %c0_0] : memref<16x16xf32, #tpu.memory_space<vmem>>, vector<16x16xf32>
    %c0_1 = arith.constant 0 : index
    %c0_2 = arith.constant 0 : index
    %1 = vector.load %arg2[%c0_1, %c0_2] : memref<16x16xf32, #tpu.memory_space<vmem>>, vector<16x16xf32>
    %cst = arith.constant 0.000000e+00 : f32
    %2 = vector.broadcast %cst : f32 to vector<16x16xf32>
    %3 = arith.subf %2, %1 : vector<16x16xf32>
    %4 = arith.addf %0, %1 : vector<16x16xf32>
    %5 = arith.subf %0, %1 : vector<16x16xf32>
    %c0_3 = arith.constant 0 : index
    %c0_4 = arith.constant 0 : index
    %c0_5 = arith.constant 0 : index
    %c0_6 = arith.constant 0 : index
    %6 = vector.load %arg3[%c0_3, %c0_4, %c0_5, %c0_6] : memref<2x2x16x16xf32, #tpu.memory_space<vmem>>, vector<1x1x16x16xf32>
    %7 = vector.shape_cast %6 : vector<1x1x16x16xf32> to vector<16x16xf32>
    %c0_7 = arith.constant 0 : index
    %c1 = arith.constant 1 : index
    %c0_8 = arith.constant 0 : index
    %c0_9 = arith.constant 0 : index
    %8 = vector.load %arg3[%c0_7, %c1, %c0_8, %c0_9] : memref<2x2x16x16xf32, #tpu.memory_space<vmem>>, vector<1x1x16x16xf32>
    %9 = vector.shape_cast %8 : vector<1x1x16x16xf32> to vector<16x16xf32>
    %cst_10 = arith.constant dense<0.000000e+00> : vector<16x16xf32>
    %10 = tpu.matmul %7, %0, %cst_10 {dimension_numbers = #tpu.dot_dimension_numbers<[1], [0], [0], [1], [0, 0, 1, 1], [], []>} : vector<16x16xf32>, vector<16x16xf32>, vector<16x16xf32> -> vector<16x16xf32>
    %cst_11 = arith.constant dense<0.000000e+00> : vector<16x16xf32>
    %11 = tpu.matmul %9, %1, %cst_11 {dimension_numbers = #tpu.dot_dimension_numbers<[1], [0], [0], [1], [0, 0, 1, 1], [], []>} : vector<16x16xf32>, vector<16x16xf32>, vector<16x16xf32> -> vector<16x16xf32>
    %12 = arith.addf %7, %9 : vector<16x16xf32>
    %cst_12 = arith.constant dense<0.000000e+00> : vector<16x16xf32>
    %13 = tpu.matmul %12, %4, %cst_12 {dimension_numbers = #tpu.dot_dimension_numbers<[1], [0], [0], [1], [0, 0, 1, 1], [], []>} : vector<16x16xf32>, vector<16x16xf32>, vector<16x16xf32> -> vector<16x16xf32>
    %14 = arith.subf %10, %11 : vector<16x16xf32>
    %15 = arith.subf %13, %10 : vector<16x16xf32>
    %16 = arith.subf %15, %11 : vector<16x16xf32>
    %cst_13 = arith.constant dense<0.000000e+00> : vector<16x16xf32>
    %17 = tpu.matmul %0, %14, %cst_13 {dimension_numbers = #tpu.dot_dimension_numbers<[1], [0], [0], [1], [0, 0, 1, 1], [], []>} : vector<16x16xf32>, vector<16x16xf32>, vector<16x16xf32> -> vector<16x16xf32>
    %cst_14 = arith.constant dense<0.000000e+00> : vector<16x16xf32>
    %18 = tpu.matmul %1, %16, %cst_14 {dimension_numbers = #tpu.dot_dimension_numbers<[1], [0], [0], [1], [0, 0, 1, 1], [], []>} : vector<16x16xf32>, vector<16x16xf32>, vector<16x16xf32> -> vector<16x16xf32>
    %19 = arith.addf %14, %16 : vector<16x16xf32>
    %cst_15 = arith.constant dense<0.000000e+00> : vector<16x16xf32>
    %20 = tpu.matmul %4, %19, %cst_15 {dimension_numbers = #tpu.dot_dimension_numbers<[1], [0], [0], [1], [0, 0, 1, 1], [], []>} : vector<16x16xf32>, vector<16x16xf32>, vector<16x16xf32> -> vector<16x16xf32>
    %21 = arith.subf %17, %18 : vector<16x16xf32>
    %22 = arith.subf %20, %17 : vector<16x16xf32>
    %23 = arith.subf %22, %18 : vector<16x16xf32>
    %c0_16 = arith.constant 0 : index
    %c0_17 = arith.constant 0 : index
    %c0_18 = arith.constant 0 : index
    %24 = vector.load %arg5[%c0_16, %c0_17, %c0_18] : memref<2x16x16xf32, #tpu.memory_space<vmem>>, vector<1x16x16xf32>
    %25 = vector.shape_cast %24 : vector<1x16x16xf32> to vector<16x16xf32>
    %cst_19 = arith.constant 1.000000e+00 : f32
    %26 = vector.broadcast %cst_19 : f32 to vector<16x16xf32>
    %27 = arith.subf %26, %25 : vector<16x16xf32>
    %28 = arith.mulf %27, %21 : vector<16x16xf32>
    %c0_20 = arith.constant 0 : index
    %c0_21 = arith.constant 0 : index
    %c0_22 = arith.constant 0 : index
    %c0_23 = arith.constant 0 : index
    %29 = vector.load %arg4[%c0_20, %c0_21, %c0_22, %c0_23] : memref<2x2x16x16xf32, #tpu.memory_space<vmem>>, vector<1x1x16x16xf32>
    %30 = vector.shape_cast %29 : vector<1x1x16x16xf32> to vector<16x16xf32>
    %31 = arith.mulf %25, %30 : vector<16x16xf32>
    %32 = arith.addf %28, %31 : vector<16x16xf32>
    %33 = arith.mulf %27, %23 : vector<16x16xf32>
    %c0_24 = arith.constant 0 : index
    %c1_25 = arith.constant 1 : index
    %c0_26 = arith.constant 0 : index
    %c0_27 = arith.constant 0 : index
    %34 = vector.load %arg4[%c0_24, %c1_25, %c0_26, %c0_27] : memref<2x2x16x16xf32, #tpu.memory_space<vmem>>, vector<1x1x16x16xf32>
    %35 = vector.shape_cast %34 : vector<1x1x16x16xf32> to vector<16x16xf32>
    %36 = arith.mulf %25, %35 : vector<16x16xf32>
    %37 = arith.addf %33, %36 : vector<16x16xf32>
    %cst_28 = arith.constant dense<0.000000e+00> : vector<16x16xf32>
    %38 = tpu.matmul %0, %32, %cst_28 {dimension_numbers = #tpu.dot_dimension_numbers<[1], [0], [0], [1], [0, 0, 1, 1], [], []>} : vector<16x16xf32>, vector<16x16xf32>, vector<16x16xf32> -> vector<16x16xf32>
    %cst_29 = arith.constant dense<0.000000e+00> : vector<16x16xf32>
    %39 = tpu.matmul %3, %37, %cst_29 {dimension_numbers = #tpu.dot_dimension_numbers<[1], [0], [0], [1], [0, 0, 1, 1], [], []>} : vector<16x16xf32>, vector<16x16xf32>, vector<16x16xf32> -> vector<16x16xf32>
    %40 = arith.addf %32, %37 : vector<16x16xf32>
    %cst_30 = arith.constant dense<0.000000e+00> : vector<16x16xf32>
    %41 = tpu.matmul %5, %40, %cst_30 {dimension_numbers = #tpu.dot_dimension_numbers<[1], [0], [0], [1], [0, 0, 1, 1], [], []>} : vector<16x16xf32>, vector<16x16xf32>, vector<16x16xf32> -> vector<16x16xf32>
    %42 = arith.subf %38, %39 : vector<16x16xf32>
    %43 = arith.subf %41, %38 : vector<16x16xf32>
    %44 = arith.subf %43, %39 : vector<16x16xf32>
    %cst_31 = arith.constant dense<0.000000e+00> : vector<16x16xf32>
    %45 = tpu.matmul %42, %0, %cst_31 {dimension_numbers = #tpu.dot_dimension_numbers<[1], [0], [0], [1], [0, 0, 1, 1], [], []>} : vector<16x16xf32>, vector<16x16xf32>, vector<16x16xf32> -> vector<16x16xf32>
    %cst_32 = arith.constant dense<0.000000e+00> : vector<16x16xf32>
    %46 = tpu.matmul %44, %3, %cst_32 {dimension_numbers = #tpu.dot_dimension_numbers<[1], [0], [0], [1], [0, 0, 1, 1], [], []>} : vector<16x16xf32>, vector<16x16xf32>, vector<16x16xf32> -> vector<16x16xf32>
    %47 = arith.addf %42, %44 : vector<16x16xf32>
    %cst_33 = arith.constant dense<0.000000e+00> : vector<16x16xf32>
    %48 = tpu.matmul %47, %5, %cst_33 {dimension_numbers = #tpu.dot_dimension_numbers<[1], [0], [0], [1], [0, 0, 1, 1], [], []>} : vector<16x16xf32>, vector<16x16xf32>, vector<16x16xf32> -> vector<16x16xf32>
    %49 = arith.subf %45, %46 : vector<16x16xf32>
    %50 = arith.subf %48, %45 : vector<16x16xf32>
    %51 = arith.subf %50, %46 : vector<16x16xf32>
    %c0_34 = arith.constant 0 : index
    %c0_35 = arith.constant 0 : index
    %c0_36 = arith.constant 0 : index
    %c0_37 = arith.constant 0 : index
    %52 = vector.load %arg6[%c0_34, %c0_35, %c0_36, %c0_37] : memref<2x2x16x16xf32, #tpu.memory_space<vmem>>, vector<1x1x16x16xf32>
    %53 = vector.shape_cast %52 : vector<1x1x16x16xf32> to vector<16x16xf32>
    %54 = vector.shape_cast %49 : vector<16x16xf32> to vector<1x1x16x16xf32>
    tpu.vector_store %arg6[%c0_34, %c0_35, %c0_36, %c0_37], %54 {strides = array<i32>} : memref<2x2x16x16xf32, #tpu.memory_space<vmem>>, vector<1x1x16x16xf32>,
    %c0_38 = arith.constant 0 : index
    %c1_39 = arith.constant 1 : index
    %c0_40 = arith.constant 0 : index
    %c0_41 = arith.constant 0 : index
    %55 = vector.load %arg6[%c0_38, %c1_39, %c0_40, %c0_41] : memref<2x2x16x16xf32, #tpu.memory_space<vmem>>, vector<1x1x16x16xf32>
    %56 = vector.shape_cast %55 : vector<1x1x16x16xf32> to vector<16x16xf32>
    %57 = vector.shape_cast %51 : vector<16x16xf32> to vector<1x1x16x16xf32>
    tpu.vector_store %arg6[%c0_38, %c1_39, %c0_40, %c0_41], %57 {strides = array<i32>} : memref<2x2x16x16xf32, #tpu.memory_space<vmem>>, vector<1x1x16x16xf32>,
    %c1_42 = arith.constant 1 : index
    %c0_43 = arith.constant 0 : index
    %c0_44 = arith.constant 0 : index
    %c0_45 = arith.constant 0 : index
    %58 = vector.load %arg3[%c1_42, %c0_43, %c0_44, %c0_45] : memref<2x2x16x16xf32, #tpu.memory_space<vmem>>, vector<1x1x16x16xf32>
    %59 = vector.shape_cast %58 : vector<1x1x16x16xf32> to vector<16x16xf32>
    %c1_46 = arith.constant 1 : index
    %c1_47 = arith.constant 1 : index
    %c0_48 = arith.constant 0 : index
    %c0_49 = arith.constant 0 : index
    %60 = vector.load %arg3[%c1_46, %c1_47, %c0_48, %c0_49] : memref<2x2x16x16xf32, #tpu.memory_space<vmem>>, vector<1x1x16x16xf32>
    %61 = vector.shape_cast %60 : vector<1x1x16x16xf32> to vector<16x16xf32>
    %cst_50 = arith.constant dense<0.000000e+00> : vector<16x16xf32>
    %62 = tpu.matmul %59, %0, %cst_50 {dimension_numbers = #tpu.dot_dimension_numbers<[1], [0], [0], [1], [0, 0, 1, 1], [], []>} : vector<16x16xf32>, vector<16x16xf32>, vector<16x16xf32> -> vector<16x16xf32>
    %cst_51 = arith.constant dense<0.000000e+00> : vector<16x16xf32>
    %63 = tpu.matmul %61, %1, %cst_51 {dimension_numbers = #tpu.dot_dimension_numbers<[1], [0], [0], [1], [0, 0, 1, 1], [], []>} : vector<16x16xf32>, vector<16x16xf32>, vector<16x16xf32> -> vector<16x16xf32>
    %64 = arith.addf %59, %61 : vector<16x16xf32>
    %cst_52 = arith.constant dense<0.000000e+00> : vector<16x16xf32>
    %65 = tpu.matmul %64, %4, %cst_52 {dimension_numbers = #tpu.dot_dimension_numbers<[1], [0], [0], [1], [0, 0, 1, 1], [], []>} : vector<16x16xf32>, vector<16x16xf32>, vector<16x16xf32> -> vector<16x16xf32>
    %66 = arith.subf %62, %63 : vector<16x16xf32>
    %67 = arith.subf %65, %62 : vector<16x16xf32>
    %68 = arith.subf %67, %63 : vector<16x16xf32>
    %cst_53 = arith.constant dense<0.000000e+00> : vector<16x16xf32>
    %69 = tpu.matmul %0, %66, %cst_53 {dimension_numbers = #tpu.dot_dimension_numbers<[1], [0], [0], [1], [0, 0, 1, 1], [], []>} : vector<16x16xf32>, vector<16x16xf32>, vector<16x16xf32> -> vector<16x16xf32>
    %cst_54 = arith.constant dense<0.000000e+00> : vector<16x16xf32>
    %70 = tpu.matmul %1, %68, %cst_54 {dimension_numbers = #tpu.dot_dimension_numbers<[1], [0], [0], [1], [0, 0, 1, 1], [], []>} : vector<16x16xf32>, vector<16x16xf32>, vector<16x16xf32> -> vector<16x16xf32>
    %71 = arith.addf %66, %68 : vector<16x16xf32>
    %cst_55 = arith.constant dense<0.000000e+00> : vector<16x16xf32>
    %72 = tpu.matmul %4, %71, %cst_55 {dimension_numbers = #tpu.dot_dimension_numbers<[1], [0], [0], [1], [0, 0, 1, 1], [], []>} : vector<16x16xf32>, vector<16x16xf32>, vector<16x16xf32> -> vector<16x16xf32>
    %73 = arith.subf %69, %70 : vector<16x16xf32>
    %74 = arith.subf %72, %69 : vector<16x16xf32>
    %75 = arith.subf %74, %70 : vector<16x16xf32>
    %c1_56 = arith.constant 1 : index
    %c0_57 = arith.constant 0 : index
    %c0_58 = arith.constant 0 : index
    %76 = vector.load %arg5[%c1_56, %c0_57, %c0_58] : memref<2x16x16xf32, #tpu.memory_space<vmem>>, vector<1x16x16xf32>
    %77 = vector.shape_cast %76 : vector<1x16x16xf32> to vector<16x16xf32>
    %cst_59 = arith.constant 1.000000e+00 : f32
    %78 = vector.broadcast %cst_59 : f32 to vector<16x16xf32>
    %79 = arith.subf %78, %77 : vector<16x16xf32>
    %80 = arith.mulf %79, %73 : vector<16x16xf32>
    %c1_60 = arith.constant 1 : index
    %c0_61 = arith.constant 0 : index
    %c0_62 = arith.constant 0 : index
    %c0_63 = arith.constant 0 : index
    %81 = vector.load %arg4[%c1_60, %c0_61, %c0_62, %c0_63] : memref<2x2x16x16xf32, #tpu.memory_space<vmem>>, vector<1x1x16x16xf32>
    %82 = vector.shape_cast %81 : vector<1x1x16x16xf32> to vector<16x16xf32>
    %83 = arith.mulf %77, %82 : vector<16x16xf32>
    %84 = arith.addf %80, %83 : vector<16x16xf32>
    %85 = arith.mulf %79, %75 : vector<16x16xf32>
    %c1_64 = arith.constant 1 : index
    %c1_65 = arith.constant 1 : index
    %c0_66 = arith.constant 0 : index
    %c0_67 = arith.constant 0 : index
    %86 = vector.load %arg4[%c1_64, %c1_65, %c0_66, %c0_67] : memref<2x2x16x16xf32, #tpu.memory_space<vmem>>, vector<1x1x16x16xf32>
    %87 = vector.shape_cast %86 : vector<1x1x16x16xf32> to vector<16x16xf32>
    %88 = arith.mulf %77, %87 : vector<16x16xf32>
    %89 = arith.addf %85, %88 : vector<16x16xf32>
    %cst_68 = arith.constant dense<0.000000e+00> : vector<16x16xf32>
    %90 = tpu.matmul %0, %84, %cst_68 {dimension_numbers = #tpu.dot_dimension_numbers<[1], [0], [0], [1], [0, 0, 1, 1], [], []>} : vector<16x16xf32>, vector<16x16xf32>, vector<16x16xf32> -> vector<16x16xf32>
    %cst_69 = arith.constant dense<0.000000e+00> : vector<16x16xf32>
    %91 = tpu.matmul %3, %89, %cst_69 {dimension_numbers = #tpu.dot_dimension_numbers<[1], [0], [0], [1], [0, 0, 1, 1], [], []>} : vector<16x16xf32>, vector<16x16xf32>, vector<16x16xf32> -> vector<16x16xf32>
    %92 = arith.addf %84, %89 : vector<16x16xf32>
    %cst_70 = arith.constant dense<0.000000e+00> : vector<16x16xf32>
    %93 = tpu.matmul %5, %92, %cst_70 {dimension_numbers = #tpu.dot_dimension_numbers<[1], [0], [0], [1], [0, 0, 1, 1], [], []>} : vector<16x16xf32>, vector<16x16xf32>, vector<16x16xf32> -> vector<16x16xf32>
    %94 = arith.subf %90, %91 : vector<16x16xf32>
    %95 = arith.subf %93, %90 : vector<16x16xf32>
    %96 = arith.subf %95, %91 : vector<16x16xf32>
    %cst_71 = arith.constant dense<0.000000e+00> : vector<16x16xf32>
    %97 = tpu.matmul %94, %0, %cst_71 {dimension_numbers = #tpu.dot_dimension_numbers<[1], [0], [0], [1], [0, 0, 1, 1], [], []>} : vector<16x16xf32>, vector<16x16xf32>, vector<16x16xf32> -> vector<16x16xf32>
    %cst_72 = arith.constant dense<0.000000e+00> : vector<16x16xf32>
    %98 = tpu.matmul %96, %3, %cst_72 {dimension_numbers = #tpu.dot_dimension_numbers<[1], [0], [0], [1], [0, 0, 1, 1], [], []>} : vector<16x16xf32>, vector<16x16xf32>, vector<16x16xf32> -> vector<16x16xf32>
    %99 = arith.addf %94, %96 : vector<16x16xf32>
    %cst_73 = arith.constant dense<0.000000e+00> : vector<16x16xf32>
    %100 = tpu.matmul %99, %5, %cst_73 {dimension_numbers = #tpu.dot_dimension_numbers<[1], [0], [0], [1], [0, 0, 1, 1], [], []>} : vector<16x16xf32>, vector<16x16xf32>, vector<16x16xf32> -> vector<16x16xf32>
    %101 = arith.subf %97, %98 : vector<16x16xf32>
    %102 = arith.subf %100, %97 : vector<16x16xf32>
    %103 = arith.subf %102, %98 : vector<16x16xf32>
    %c1_74 = arith.constant 1 : index
    %c0_75 = arith.constant 0 : index
    %c0_76 = arith.constant 0 : index
    %c0_77 = arith.constant 0 : index
    %104 = vector.load %arg6[%c1_74, %c0_75, %c0_76, %c0_77] : memref<2x2x16x16xf32, #tpu.memory_space<vmem>>, vector<1x1x16x16xf32>
    %105 = vector.shape_cast %104 : vector<1x1x16x16xf32> to vector<16x16xf32>
    %106 = vector.shape_cast %101 : vector<16x16xf32> to vector<1x1x16x16xf32>
    tpu.vector_store %arg6[%c1_74, %c0_75, %c0_76, %c0_77], %106 {strides = array<i32>} : memref<2x2x16x16xf32, #tpu.memory_space<vmem>>, vector<1x1x16x16xf32>,
    %c1_78 = arith.constant 1 : index
    %c1_79 = arith.constant 1 : index
    %c0_80 = arith.constant 0 : index
    %c0_81 = arith.constant 0 : index
    %107 = vector.load %arg6[%c1_78, %c1_79, %c0_80, %c0_81] : memref<2x2x16x16xf32, #tpu.memory_space<vmem>>, vector<1x1x16x16xf32>
    %108 = vector.shape_cast %107 : vector<1x1x16x16xf32> to vector<16x16xf32>
    %109 = vector.shape_cast %103 : vector<16x16xf32> to vector<1x1x16x16xf32>
    tpu.vector_store %arg6[%c1_78, %c1_79, %c0_80, %c0_81], %109 {strides = array<i32>} : memref<2x2x16x16xf32, #tpu.memory_space<vmem>>, vector<1x1x16x16xf32>,
    return
  }
  func.func @transform_0(%arg0: i32) -> (i32, i32) {
    %c0_i32 = arith.constant 0 : i32
    %c0_i32_0 = arith.constant 0 : i32
    %c0_i32_1 = arith.constant 0 : i32
    return %c0_i32, %c0_i32_0 : i32, i32
  }
  func.func @transform_1(%arg0: i32) -> (i32, i32) {
    %c0_i32 = arith.constant 0 : i32
    %c0_i32_0 = arith.constant 0 : i32
    %c0_i32_1 = arith.constant 0 : i32
    return %c0_i32, %c0_i32_0 : i32, i32
  }
  func.func @transform_2(%arg0: i32) -> (i32, i32, i32, i32) {
    %c0_i32 = arith.constant 0 : i32
    %c0_i32_0 = arith.constant 0 : i32
    %c0_i32_1 = arith.constant 0 : i32
    %c0_i32_2 = arith.constant 0 : i32
    return %arg0, %c0_i32, %c0_i32_0, %c0_i32_1 : i32, i32, i32, i32
  }
  func.func @transform_3(%arg0: i32) -> (i32, i32, i32, i32) {
    %c0_i32 = arith.constant 0 : i32
    %c0_i32_0 = arith.constant 0 : i32
    %c0_i32_1 = arith.constant 0 : i32
    %c0_i32_2 = arith.constant 0 : i32
    return %arg0, %c0_i32, %c0_i32_0, %c0_i32_1 : i32, i32, i32, i32
  }
  func.func @transform_4(%arg0: i32) -> (i32, i32, i32) {
    %c0_i32 = arith.constant 0 : i32
    %c0_i32_0 = arith.constant 0 : i32
    %c0_i32_1 = arith.constant 0 : i32
    return %arg0, %c0_i32, %c0_i32_0 : i32, i32, i32
  }
  func.func @transform_5(%arg0: i32) -> (i32, i32, i32, i32) {
    %c0_i32 = arith.constant 0 : i32
    %c0_i32_0 = arith.constant 0 : i32
    %c0_i32_1 = arith.constant 0 : i32
    %c0_i32_2 = arith.constant 0 : i32
    return %arg0, %c0_i32, %c0_i32_0, %c0_i32_1 : i32, i32, i32, i32
  }
}

</mosaic_0001>

<bundles_post_ra>
// kernel: tpu_custom_call.1
= control target key start
LH: loop header
LB: loop body
LE: loop exit
PB: predicated region body
PF: predicated region fallthrough
CT: control target
= control target key end

     0   :  { %10 = vsyncpa [#allocation3], 0  ;;  %s2831_s0 = inlined_call_operand.hbm [shape: f32[16,16], index: 0, kind: input, shape index: {}]   ;;  %s2832_s1 = inlined_call_operand.hbm [shape: f32[16,16], index: 1, kind: input, shape index: {}]   ;;  %s2833_s2 = inlined_call_operand.hbm [shape: f32[2,2,16,16], index: 2, kind: input, shape index: {}]   ;;  %s2834_s3 = inlined_call_operand.hbm [shape: f32[2,2,16,16], index: 3, kind: input, shape index: {}]   ;;  %s2835_s4 = inlined_call_operand.hbm [shape: f32[2,16,16], index: 4, kind: input, shape index: {}]   ;;  %s2836_s5 = inlined_call_operand.hbm [shape: f32[2,2,16,16], index: 5, kind: output, shape index: {}]  }
   0x1   :  { %11 = vsyncpa [#allocation6], 0 }
   0x2   :  { %12 = vsyncpa [#allocation9], 0 }
   0x3   :  { %13 = vsyncpa [#allocation4], 0  ;;  %s2599_s18 = smov [#allocation5]   ;;  %s2600_s20 = smov [#allocation8]  }
   0x4   :  { %s31_s19 = sshll.u32 %s2599_s18, 4  ;;  %s55_s21 = sshll.u32 %s2600_s20, 4  ;;  %s32_s19 = int_to_ptr.vmem [resolvable:$true] %s31_s19  ;;  %s56_s21 = int_to_ptr.vmem [resolvable:$true] %s55_s21 }
   0x5   :  { %s2479_s22 = scalar_lea.vmem %s32_s19, 256  ;;  %p2484_p1 = scmp.lt.s32.totalorder %s32_s19, %s32_s19 }
   0x6   :  { %p2480_p0 = scmp.ne.s32.totalorder %s32_s19, %s2479_s22  ;;  %p2485_p2 = scmp.lt.s32.totalorder %s2479_s22, %s2479_s22 }
   0x8   :  { %p2486_p3 = por %p2485_p2, %p2484_p1 }
   0xa   :  { %p2487_p4 = pnand %p2486_p3, %p2480_p0 }
   0xc   :  { %2490 = shalt.err (!%p2487_p4)
}
   0xd   :  { %s2601_s23 = smov 128   ;;  %s2602_s24 = smov 8  }
   0xe   :  { %37 = dma.hbm_to_vmem [thread:$0]  %s2832_s1, 256, %s32_s19, [#allocation6], %s2601_s23, %s2601_s23, %s2602_s24  }
   0xf   :  { %s2499_s27 = scalar_lea.vmem %s56_s21, 1024  ;;  %p2504_p6 = scmp.lt.s32.totalorder %s56_s21, %s56_s21 }
  0x10   :  { %p2500_p5 = scmp.ne.s32.totalorder %s56_s21, %s2499_s27  ;;  %p2505_p7 = scmp.lt.s32.totalorder %s2499_s27, %s2499_s27 }
  0x12   :  { %p2506_p8 = por %p2505_p7, %p2504_p6 }
  0x14   :  { %p2507_p9 = pnand %p2506_p8, %p2500_p5 }
  0x16   :  { %2510 = shalt.err (!%p2507_p9)
}
  0x17   :  { %61 = dma.hbm_to_vmem [thread:$0]  %s2834_s3, 1024, %s56_s21, [#allocation9], %s2601_s23, %s2601_s23, %s2602_s24  }
  0x18   :  { %s2603_s30 = smov [#allocation2]   ;;  %s2604_s7 = smov [#allocation7]  }
  0x19   :  { %s19_s6 = sshll.u32 %s2603_s30, 4  ;;  %s43_s8 = sshll.u32 %s2604_s7, 4  ;;  %s20_s6 = int_to_ptr.vmem [resolvable:$true] %s19_s6  ;;  %s44_s8 = int_to_ptr.vmem [resolvable:$true] %s43_s8 }
  0x1a   :  { %s2519_s1 = scalar_lea.vmem %s20_s6, 256  ;;  %p2524_p11 = scmp.lt.s32.totalorder %s20_s6, %s20_s6 }
  0x1b   :  { %p2520_p10 = scmp.ne.s32.totalorder %s20_s6, %s2519_s1  ;;  %p2525_p12 = scmp.lt.s32.totalorder %s2519_s1, %s2519_s1 }
  0x1d   :  { %p2526_p13 = por %p2525_p12, %p2524_p11 }
  0x1f   :  { %p2527_p0 = pnand %p2526_p13, %p2520_p10 }
  0x21   :  { %2530 = shalt.err (!%p2527_p0)
}
  0x22   :  { %25 = dma.hbm_to_vmem [thread:$0]  %s2831_s0, 256, %s20_s6, [#allocation3], %s2601_s23, %s2601_s23, %s2602_s24  }
  0x23   :  { %s2539_s3 = scalar_lea.vmem %s44_s8, 1024  ;;  %p2544_p2 = scmp.lt.s32.totalorder %s44_s8, %s44_s8 }
  0x24   :  { %p2540_p1 = scmp.ne.s32.totalorder %s44_s8, %s2539_s3  ;;  %p2545_p3 = scmp.lt.s32.totalorder %s2539_s3, %s2539_s3 }
  0x26   :  { %p2546_p4 = por %p2545_p3, %p2544_p2 }
  0x28   :  { %p2547_p5 = pnand %p2546_p4, %p2540_p1 }
  0x2a   :  { %2550 = shalt.err (!%p2547_p5)
}
  0x2b   :  { %49 = dma.hbm_to_vmem [thread:$0]  %s2833_s2, 1024, %s44_s8, [#allocation6], %s2601_s23, %s2601_s23, %s2602_s24  }
  0x2c   :  { %s2605_s13 = smov [#allocation10]  }
  0x2d   :  { %s67_s14 = sshll.u32 %s2605_s13, 4  ;;  %s68_s14 = int_to_ptr.vmem [resolvable:$true] %s67_s14 }
  0x2e   :  { %s2559_s15 = scalar_lea.vmem %s68_s14, 512  ;;  %p2564_p7 = scmp.lt.s32.totalorder %s68_s14, %s68_s14 }
  0x2f   :  { %p2560_p6 = scmp.ne.s32.totalorder %s68_s14, %s2559_s15  ;;  %p2565_p8 = scmp.lt.s32.totalorder %s2559_s15, %s2559_s15 }
  0x31   :  { %p2566_p9 = por %p2565_p8, %p2564_p7 }
  0x33   :  { %p2567_p10 = pnand %p2566_p9, %p2560_p6 }
  0x35   :  { %2570 = shalt.err (!%p2567_p10)
}
  0x36   :  { %73 = dma.hbm_to_vmem [thread:$0]  %s2835_s4, 512, %s68_s14, [#allocation9], %s2601_s23, %s2601_s23, %s2602_s24  }
  0x37   :  { %2591 = dma.done.wait [#allocation3], 256  }
  0x38   :  { %2592 = vsyncadd [#allocation3], 4294967040 }
  0x39   :  { %2593 = dma.done.wait [#allocation6], 1280  }
  0x3a   :  { %2594 = vsyncadd [#allocation6], 4294966016 }
  0x3b   :  { %2595 = dma.done.wait [#allocation9], 1536  }
  0x3c   :  { %2596 = vsyncadd [#allocation9], 4294965760  ;;  %v2667_v0 = vld [vmem:[#allocation2 + $0x8] sm:$0xff]  ;;  %v2669_v1 = vld [vmem:[#allocation5 + $0x8] sm:$0xff]  ;;  %vm104_vm0 = vcmask 130048   ;;  %s2606_s2 = smov [#allocation11]  }
  0x3d   :  { %v2671_v2 = vld [vmem:[#allocation2] sm:$0xff]  ;;  %2295 = vmatprep.subr.mxu0 %v2667_v0  ;;  %2302 = vmatprep.subr.mxu1 %v2669_v1  ;;  %v2675_v3 = vld [vmem:[#allocation5] sm:$0xff]  ;;  %v100_v7 = vld [vmem:[#allocation7 + $0x8] sm:$0xff]  ;;  %v2683_v9 = vadd.f32 %v2669_v1, %v2667_v0  ;;  %v2727_v61 = vsub.f32 0.0, %v2669_v1  ;;  %v2733_v63 = vsub.f32 %v2667_v0, %v2669_v1  ;;  %s2137_s4 = sshll.u32 %s2606_s2, 4  ;;  %s2138_s4 = int_to_ptr.vmem [resolvable:$true] %s2137_s4 }
  0x3e   :  { %v99_v4 = vld [vmem:[#allocation7] sm:$0xff]  ;;  %2296 = vmatpush3.msra.mxu0 %v2667_v0  ;;  %2303 = vmatpush3.msra.mxu1 %v2669_v1  ;;  %v102_v5 = vld [vmem:[#allocation7 + $0x10] sm:$0xff]  ;;  %v103_v8 = vld [vmem:[#allocation7 + $0x18] sm:$0xff]  ;;  %v2691_v10 = vadd.f32 %v2675_v3, %v2671_v2  ;;  %v2716_v26 = vsub.f32 0.0, %v2675_v3  ;;  %v2722_v56 = vsub.f32 %v2671_v2, %v2675_v3  ;;  %s2571_s17 = scalar_lea.vmem %s2138_s4, 1024  ;;  %p2576_p12 = scmp.lt.s32.totalorder %s2138_s4, %s2138_s4 }
  0x3f   :  { %2297 = vmatprep.subr.mxu0 %v2671_v2  ;;  %2304 = vmatprep.subr.mxu1 %v2675_v3  ;;  %v267_v6 = vadd.f32 %v102_v5, %v99_v4  ;;  %v268_v11 = vadd.f32 %v103_v8, %v100_v7  ;;  %v608_v28 = vld [vmem:[#allocation10 + $0x8] sm:$0xff]  ;;  %v607_v29 = vld [vmem:[#allocation10] sm:$0xff]  ;;  %v623_v38 = vld [vmem:[#allocation8 + $0x18] sm:$0xff]  ;;  %p2572_p11 = scmp.ne.s32.totalorder %s2138_s4, %s2571_s17  ;;  %p2577_p13 = scmp.lt.s32.totalorder %s2571_s17, %s2571_s17 }
  0x40   :  { %2298 = vmatpush3.msra.mxu0 %v2671_v2  ;;  %2299 = vmatprep.mubr.msk.f32.mxu0 %vm104_vm0, %v99_v4  ;;  %v614_v30 = vld [vmem:[#allocation8 + $0x8] sm:$0xff]  ;;  %v610_v31 = vsub.f32 1.0, %v608_v28  ;;  %v613_v34 = vld [vmem:[#allocation8] sm:$0xff]  ;;  %v609_v36 = vsub.f32 1.0, %v607_v29  ;;  %v625_v46 = vmul.f32 %v623_v38, %v608_v28  ;;  %v622_v47 = vld [vmem:[#allocation8 + $0x10] sm:$0xff] }
  0x41   :  { %2305 = vmatpush3.msra.mxu1 %v2675_v3  ;;  %2306 = vmatprep.mubr.msk.f32.mxu1 %vm104_vm0, %v102_v5  ;;  %v616_v37 = vmul.f32 %v614_v30, %v608_v28  ;;  %v615_v44 = vmul.f32 %v613_v34, %v607_v29  ;;  %v624_v55 = vmul.f32 %v622_v47, %v607_v29  ;;  %p2578_p0 = por %p2577_p13, %p2576_p12 }
  0x42   :  { %2300 = vmatmul.mubr.msk.f32.vlgmr.msra.gmra.mxu0 %vm104_vm0, %v100_v7  ;;  %2307 = vmatmul.mubr.msk.f32.vlgmr.msra.gmra.mxu1 %vm104_vm0, %v103_v8 }
  0x43   :  { %2309 = vmatprep.subr.mxu0 %v2683_v9  ;;  %2313 = vmatprep.mubr.msk.f32.mxu0 %vm104_vm0, %v267_v6  ;;  %p2579_p1 = pnand %p2578_p0, %p2572_p11 }
  0x44   :  { %2310 = vmatpush3.msra.mxu0 %v2683_v9  ;;  %2320 = vmatprep.mubr.msk.f32.mxu1 %vm104_vm0, %v2671_v2 }
  0x45   :  { %2311 = vmatprep.subr.mxu0 %v2691_v10 }
  0x46   :  { %2312 = vmatpush3.msra.mxu0 %v2691_v10 }
  0x47   :  { %2314 = vmatmul.mubr.msk.f32.vlgmr.msra.gmra.mxu0 %vm104_vm0, %v268_v11 }
  0x48   :  { %2327 = vmatprep.mubr.msk.f32.mxu0 %vm104_vm0, %v2675_v3 }
 0x102   :  { %v2301_v12 = vpop.f32.mrf.mxu0  ;;  %v2308_v13 = vpop.f32.mrf.mxu1 }
 0x103   :  { %v351_v14 = vsub.f32 %v2301_v12, %v2308_v13 }
 0x104   :  { %v177_v15 = vpop.f32.mrf.mxu0  ;;  %v258_v16 = vpop.f32.mrf.mxu1 }
 0x105   :  { %v350_v17 = vsub.f32 %v177_v15, %v258_v16  ;;  %2316 = vmatprep.subr.mxu1 %v351_v14 }
 0x106   :  { %2317 = vmatpush3.msra.mxu1 %v351_v14 }
 0x107   :  { %v2315_v18 = vpop.f32.mrf.mxu0  ;;  %2318 = vmatprep.subr.mxu1 %v350_v17 }
 0x108   :  { %v353_v19 = vsub.f32 %v2315_v18, %v2301_v12  ;;  %2319 = vmatpush3.msra.mxu1 %v350_v17 }
 0x109   :  { %v341_v20 = vpop.f32.mrf.mxu0  ;;  %2321 = vmatmul.mubr.msk.f32.vlgmr.msra.gmra.mxu1 %vm104_vm0, %v2667_v0 }
 0x10a   :  { %v355_v21 = vsub.f32 %v353_v19, %v2308_v13  ;;  %v352_v22 = vsub.f32 %v341_v20, %v177_v15  ;;  %2334 = vmatprep.mubr.msk.f32.mxu1 %vm104_vm0, %v2691_v10  ;;  %v1130_v20 = vld [vmem:[#allocation7 + $0x20] sm:$0xff] }
 0x10c   :  { %v354_v23 = vsub.f32 %v352_v22, %v258_v16  ;;  %2323 = vmatprep.subr.mxu0 %v355_v21  ;;  %v519_v24 = vadd.f32 %v355_v21, %v351_v14  ;;  %v1133_v22 = vld [vmem:[#allocation7 + $0x30] sm:$0xff] }
 0x10d   :  { %2324 = vmatpush3.msra.mxu0 %v355_v21  ;;  %v1131_v21 = vld [vmem:[#allocation7 + $0x28] sm:$0xff] }
 0x10e   :  { %2325 = vmatprep.subr.mxu0 %v354_v23  ;;  %2330 = vmatprep.subr.mxu1 %v519_v24  ;;  %v518_v25 = vadd.f32 %v354_v23, %v350_v17 }
 0x10f   :  { %2326 = vmatpush3.msra.mxu0 %v354_v23  ;;  %2331 = vmatpush3.msra.mxu1 %v519_v24  ;;  %v1134_v23 = vld [vmem:[#allocation7 + $0x38] sm:$0xff]  ;;  %v1297_v24 = vadd.f32 %v1133_v22, %v1130_v20 }
 0x110   :  { %2328 = vmatmul.mubr.msk.f32.vlgmr.msra.gmra.mxu0 %vm104_vm0, %v2669_v1  ;;  %2332 = vmatprep.subr.mxu1 %v518_v25 }
 0x111   :  { %2333 = vmatpush3.msra.mxu1 %v518_v25  ;;  %2341 = vmatprep.mubr.msk.f32.mxu0 %vm104_vm0, %v2671_v2  ;;  %v1298_v25 = vadd.f32 %v1134_v23, %v1131_v21 }
 0x112   :  { %2335 = vmatmul.mubr.msk.f32.vlgmr.msra.gmra.mxu1 %vm104_vm0, %v2683_v9 }
 0x113   :  { %2348 = vmatprep.mubr.msk.f32.mxu1 %vm104_vm0, %v2716_v26 }
 0x1c9   :  { %v2322_v27 = vpop.f32.mrf.mxu1 }
 0x1cb   :  { %v428_v32 = vpop.f32.mrf.mxu1 }
 0x1d0   :  { %v2329_v33 = vpop.f32.mrf.mxu0 }
 0x1d1   :  { %v602_v35 = vsub.f32 %v2322_v27, %v2329_v33 }
 0x1d2   :  { %v509_v39 = vpop.f32.mrf.mxu0  ;;  %v2336_v40 = vpop.f32.mrf.mxu1 }
 0x1d3   :  { %v612_v41 = vmul.f32 %v610_v31, %v602_v35  ;;  %v601_v42 = vsub.f32 %v428_v32, %v509_v39  ;;  %v604_v43 = vsub.f32 %v2336_v40, %v2322_v27 }
 0x1d4   :  { %v592_v45 = vpop.f32.mrf.mxu1 }
 0x1d5   :  { %v611_v48 = vmul.f32 %v609_v36, %v601_v42  ;;  %v606_v49 = vsub.f32 %v604_v43, %v2329_v33  ;;  %v603_v50 = vsub.f32 %v592_v45, %v428_v32  ;;  %v618_v51 = vadd.f32 %v616_v37, %v612_v41 }
 0x1d7   :  { %v620_v52 = vmul.f32 %v610_v31, %v606_v49  ;;  %v605_v53 = vsub.f32 %v603_v50, %v509_v39  ;;  %2337 = vmatprep.subr.mxu0 %v618_v51  ;;  %v617_v54 = vadd.f32 %v615_v44, %v611_v48 }
 0x1d8   :  { %2338 = vmatpush3.msra.mxu0 %v618_v51 }
 0x1d9   :  { %v619_v57 = vmul.f32 %v609_v36, %v605_v53  ;;  %2339 = vmatprep.subr.mxu0 %v617_v54  ;;  %v627_v58 = vadd.f32 %v625_v46, %v620_v52  ;;  %v1621_v52 = vld [vmem:[#allocation10 + $0x18] sm:$0xff]  ;;  %v1620_v53 = vld [vmem:[#allocation10 + $0x10] sm:$0xff] }
 0x1da   :  { %2340 = vmatpush3.msra.mxu0 %v617_v54 }
 0x1db   :  { %2342 = vmatmul.mubr.msk.f32.vlgmr.msra.gmra.mxu0 %vm104_vm0, %v2667_v0  ;;  %2344 = vmatprep.subr.mxu1 %v627_v58  ;;  %v626_v59 = vadd.f32 %v624_v55, %v619_v57  ;;  %v785_v60 = vadd.f32 %v627_v58, %v618_v51  ;;  %v1623_v55 = vsub.f32 1.0, %v1621_v52 }
 0x1dc   :  { %2345 = vmatpush3.msra.mxu1 %v627_v58  ;;  %2355 = vmatprep.mubr.msk.f32.mxu0 %vm104_vm0, %v2722_v56 }
 0x1dd   :  { %2346 = vmatprep.subr.mxu1 %v626_v59  ;;  %2351 = vmatprep.subr.mxu0 %v785_v60  ;;  %v784_v62 = vadd.f32 %v626_v59, %v617_v54  ;;  %v1628_v54 = vld [vmem:[#allocation8 + $0x28] sm:$0xff] }
 0x1de   :  { %2347 = vmatpush3.msra.mxu1 %v626_v59  ;;  %2352 = vmatpush3.msra.mxu0 %v785_v60  ;;  %v1627_v59 = vld [vmem:[#allocation8 + $0x20] sm:$0xff]  ;;  %v1622_v60 = vsub.f32 1.0, %v1620_v53 }
 0x1df   :  { %2349 = vmatmul.mubr.msk.f32.vlgmr.msra.gmra.mxu1 %vm104_vm0, %v2727_v61  ;;  %2353 = vmatprep.subr.mxu0 %v784_v62 }
 0x1e0   :  { %2354 = vmatpush3.msra.mxu0 %v784_v62  ;;  %2358 = vmatprep.subr.mxu1 %v2667_v0  ;;  %v1630_v62 = vmul.f32 %v1628_v54, %v1621_v52 }
 0x1e1   :  { %2356 = vmatmul.mubr.msk.f32.vlgmr.msra.gmra.mxu0 %vm104_vm0, %v2733_v63  ;;  %2359 = vmatpush3.msra.mxu1 %v2667_v0 }
 0x1e2   :  { %2360 = vmatprep.subr.mxu1 %v2671_v2  ;;  %2365 = vmatprep.subr.mxu0 %v2727_v61 }
 0x1e3   :  { %2361 = vmatpush3.msra.mxu1 %v2671_v2  ;;  %2366 = vmatpush3.msra.mxu0 %v2727_v61 }
 0x1e4   :  { %2367 = vmatprep.subr.mxu0 %v2716_v26  ;;  %2372 = vmatprep.subr.mxu1 %v2733_v63 }
 0x1e5   :  { %2368 = vmatpush3.msra.mxu0 %v2716_v26 }
 0x1e6   :  { %2379 = vmatprep.subr.mxu0 %v2667_v0 }
 0x29b   :  { %v2343_v4 = vpop.f32.mrf.mxu0 }
 0x29d   :  { %v694_v5 = vpop.f32.mrf.mxu0 }
 0x29f   :  { %v2350_v6 = vpop.f32.mrf.mxu1 }
 0x2a0   :  { %v868_v13 = vsub.f32 %v2343_v4, %v2350_v6 }
 0x2a1   :  { %v775_v7 = vpop.f32.mrf.mxu1  ;;  %v2357_v8 = vpop.f32.mrf.mxu0 }
 0x2a2   :  { %v867_v11 = vsub.f32 %v694_v5, %v775_v7  ;;  %v870_v12 = vsub.f32 %v2357_v8, %v2343_v4  ;;  %v1637_v4 = vld [vmem:[#allocation8 + $0x38] sm:$0xff] }
 0x2a3   :  { %v858_v14 = vpop.f32.mrf.mxu0 }
 0x2a4   :  { %v869_v15 = vsub.f32 %v858_v14, %v694_v5  ;;  %2362 = vmatprep.mubr.msk.f32.mxu1 %vm104_vm0, %v867_v11  ;;  %v872_v16 = vsub.f32 %v870_v12, %v2350_v6  ;;  %v1636_v14 = vld [vmem:[#allocation8 + $0x30] sm:$0xff] }
 0x2a5   :  { %2363 = vmatmul.mubr.msk.f32.vlgmr.msra.gmra.mxu1 %vm104_vm0, %v868_v13 }
 0x2a6   :  { %v871_v17 = vsub.f32 %v869_v15, %v775_v7  ;;  %2373 = vmatpush3.msra.mxu1 %v2733_v63  ;;  %v1036_v19 = vadd.f32 %v872_v16, %v868_v13  ;;  %v1639_v13 = vmul.f32 %v1637_v4, %v1621_v52 }
 0x2a7   :  { %2374 = vmatprep.subr.mxu1 %v2722_v56 }
 0x2a8   :  { %v1035_v18 = vadd.f32 %v871_v17, %v867_v11  ;;  %2369 = vmatprep.mubr.msk.f32.mxu0 %vm104_vm0, %v871_v17  ;;  %2375 = vmatpush3.msra.mxu1 %v2722_v56  ;;  %v1629_v11 = vmul.f32 %v1627_v59, %v1620_v53 }
 0x2a9   :  { %2370 = vmatmul.mubr.msk.f32.vlgmr.msra.gmra.mxu0 %vm104_vm0, %v872_v16  ;;  %2386 = vmatprep.subr.mxu1 %v2669_v1 }
 0x2aa   :  { %2376 = vmatprep.mubr.msk.f32.mxu1 %vm104_vm0, %v1035_v18  ;;  %2380 = vmatpush3.msra.mxu0 %v2667_v0 }
 0x2ab   :  { %2377 = vmatmul.mubr.msk.f32.vlgmr.msra.gmra.mxu1 %vm104_vm0, %v1036_v19  ;;  %2381 = vmatprep.subr.mxu0 %v2671_v2 }
 0x2ac   :  { %2382 = vmatpush3.msra.mxu0 %v2671_v2  ;;  %2383 = vmatprep.mubr.msk.f32.mxu0 %vm104_vm0, %v1130_v20 }
 0x2ad   :  { %2387 = vmatpush3.msra.mxu1 %v2669_v1  ;;  %2384 = vmatmul.mubr.msk.f32.vlgmr.msra.gmra.mxu0 %vm104_vm0, %v1131_v21 }
 0x2ae   :  { %2388 = vmatprep.subr.mxu1 %v2675_v3  ;;  %2393 = vmatprep.subr.mxu0 %v2683_v9 }
 0x2af   :  { %2389 = vmatpush3.msra.mxu1 %v2675_v3  ;;  %2390 = vmatprep.mubr.msk.f32.mxu1 %vm104_vm0, %v1133_v22  ;;  %v1638_v22 = vmul.f32 %v1636_v14, %v1620_v53 }
 0x2b0   :  { %2394 = vmatpush3.msra.mxu0 %v2683_v9  ;;  %2391 = vmatmul.mubr.msk.f32.vlgmr.msra.gmra.mxu1 %vm104_vm0, %v1134_v23 }
 0x2b1   :  { %2395 = vmatprep.subr.mxu0 %v2691_v10  ;;  %2397 = vmatprep.mubr.msk.f32.mxu0 %vm104_vm0, %v1297_v24 }
 0x2b2   :  { %2396 = vmatpush3.msra.mxu0 %v2691_v10  ;;  %2404 = vmatprep.mubr.msk.f32.mxu1 %vm104_vm0, %v2671_v2 }
 0x2b3   :  { %2398 = vmatmul.mubr.msk.f32.vlgmr.msra.gmra.mxu0 %vm104_vm0, %v1298_v25 }
 0x2b4   :  { %2411 = vmatprep.mubr.msk.f32.mxu0 %vm104_vm0, %v2675_v3 }
 0x365   :  { %v2364_v27 = vpop.f32.mrf.mxu1 }
 0x367   :  { %v945_v28 = vpop.f32.mrf.mxu1 }
 0x369   :  { %v2371_v29 = vpop.f32.mrf.mxu0 }
 0x36a   :  { %v1119_v30 = vsub.f32 %v2364_v27, %v2371_v29 }
 0x36b   :  { %v1026_v31 = vpop.f32.mrf.mxu0  ;;  %v2378_v32 = vpop.f32.mrf.mxu1 }
 0x36c   :  { %1125 = vst.msk [vmem:[#allocation11 + $0x8] sm:$0xff] %vm104_vm0, %v1119_v30  ;;  %v1118_v33 = vsub.f32 %v945_v28, %v1026_v31  ;;  %v1121_v34 = vsub.f32 %v2378_v32, %v2364_v27 }
 0x36d   :  { %v1109_v35 = vpop.f32.mrf.mxu1  ;;  %v2385_v36 = vpop.f32.mrf.mxu0 }
 0x36e   :  { %1124 = vst.msk [vmem:[#allocation11] sm:$0xff] %vm104_vm0, %v1118_v33  ;;  %v1123_v37 = vsub.f32 %v1121_v34, %v2371_v29  ;;  %v1120_v38 = vsub.f32 %v1109_v35, %v945_v28 }
 0x36f   :  { %v1207_v39 = vpop.f32.mrf.mxu0 }
 0x370   :  { %1128 = vst.msk [vmem:[#allocation11 + $0x18] sm:$0xff] %vm104_vm0, %v1123_v37  ;;  %v1122_v3 = vsub.f32 %v1120_v38, %v1026_v31  ;;  %v2392_v40 = vpop.f32.mrf.mxu1 }
 0x371   :  { %v1381_v41 = vsub.f32 %v2385_v36, %v2392_v40 }
 0x372   :  { %1127 = vst.msk [vmem:[#allocation11 + $0x10] sm:$0xff] %vm104_vm0, %v1122_v3  ;;  %v1288_v42 = vpop.f32.mrf.mxu1 }
 0x373   :  { %v1380_v43 = vsub.f32 %v1207_v39, %v1288_v42  ;;  %v2399_v44 = vpop.f32.mrf.mxu0  ;;  %2400 = vmatprep.subr.mxu1 %v1381_v41 }
 0x374   :  { %v1383_v45 = vsub.f32 %v2399_v44, %v2385_v36  ;;  %2401 = vmatpush3.msra.mxu1 %v1381_v41 }
 0x375   :  { %v1371_v46 = vpop.f32.mrf.mxu0  ;;  %2402 = vmatprep.subr.mxu1 %v1380_v43 }
 0x376   :  { %v1385_v47 = vsub.f32 %v1383_v45, %v2392_v40  ;;  %v1382_v48 = vsub.f32 %v1371_v46, %v1207_v39  ;;  %2403 = vmatpush3.msra.mxu1 %v1380_v43 }
 0x377   :  { %2405 = vmatmul.mubr.msk.f32.vlgmr.msra.gmra.mxu1 %vm104_vm0, %v2667_v0 }
 0x378   :  { %v1384_v49 = vsub.f32 %v1382_v48, %v1288_v42  ;;  %2407 = vmatprep.subr.mxu0 %v1385_v47  ;;  %v1537_v50 = vadd.f32 %v1385_v47, %v1381_v41  ;;  %2418 = vmatprep.mubr.msk.f32.mxu1 %vm104_vm0, %v2691_v10 }
 0x379   :  { %2408 = vmatpush3.msra.mxu0 %v1385_v47 }
 0x37a   :  { %2409 = vmatprep.subr.mxu0 %v1384_v49  ;;  %2414 = vmatprep.subr.mxu1 %v1537_v50  ;;  %v1536_v51 = vadd.f32 %v1384_v49, %v1380_v43 }
 0x37b   :  { %2410 = vmatpush3.msra.mxu0 %v1384_v49  ;;  %2415 = vmatpush3.msra.mxu1 %v1537_v50 }
 0x37c   :  { %2412 = vmatmul.mubr.msk.f32.vlgmr.msra.gmra.mxu0 %vm104_vm0, %v2669_v1  ;;  %2416 = vmatprep.subr.mxu1 %v1536_v51 }
 0x37d   :  { %2417 = vmatpush3.msra.mxu1 %v1536_v51  ;;  %2425 = vmatprep.mubr.msk.f32.mxu0 %vm104_vm0, %v2671_v2 }
 0x37e   :  { %2419 = vmatmul.mubr.msk.f32.vlgmr.msra.gmra.mxu1 %vm104_vm0, %v2683_v9 }
 0x37f   :  { %2432 = vmatprep.mubr.msk.f32.mxu1 %vm104_vm0, %v2716_v26 }
 0x437   :  { %v2406_v10 = vpop.f32.mrf.mxu1 }
 0x439   :  { %v1452_v57 = vpop.f32.mrf.mxu1 }
 0x43c   :  { %v2413_v58 = vpop.f32.mrf.mxu0 }
 0x43d   :  { %v1614_v1 = vsub.f32 %v2406_v10, %v2413_v58 }
 0x43e   :  { %v1527_v5 = vpop.f32.mrf.mxu0  ;;  %v2420_v6 = vpop.f32.mrf.mxu1 }
 0x43f   :  { %v1625_v7 = vmul.f32 %v1623_v55, %v1614_v1  ;;  %v1613_v8 = vsub.f32 %v1452_v57, %v1527_v5  ;;  %v1616_v9 = vsub.f32 %v2420_v6, %v2406_v10 }
 0x440   :  { %v1604_v12 = vpop.f32.mrf.mxu1 }
 0x441   :  { %v1624_v15 = vmul.f32 %v1622_v60, %v1613_v8  ;;  %v1618_v16 = vsub.f32 %v1616_v9, %v2413_v58  ;;  %v1615_v17 = vsub.f32 %v1604_v12, %v1452_v57  ;;  %v1632_v18 = vadd.f32 %v1630_v62, %v1625_v7 }
 0x443   :  { %v1634_v19 = vmul.f32 %v1623_v55, %v1618_v16  ;;  %v1617_v20 = vsub.f32 %v1615_v17, %v1527_v5  ;;  %2421 = vmatprep.subr.mxu0 %v1632_v18  ;;  %v1631_v21 = vadd.f32 %v1629_v11, %v1624_v15 }
 0x444   :  { %2422 = vmatpush3.msra.mxu0 %v1632_v18 }
 0x445   :  { %v1633_v23 = vmul.f32 %v1622_v60, %v1617_v20  ;;  %2423 = vmatprep.subr.mxu0 %v1631_v21  ;;  %v1641_v24 = vadd.f32 %v1639_v13, %v1634_v19 }
 0x446   :  { %2424 = vmatpush3.msra.mxu0 %v1631_v21 }
 0x447   :  { %2428 = vmatprep.subr.mxu1 %v1641_v24  ;;  %2426 = vmatmul.mubr.msk.f32.vlgmr.msra.gmra.mxu0 %vm104_vm0, %v2667_v0  ;;  %v1640_v25 = vadd.f32 %v1638_v22, %v1633_v23  ;;  %v1793_v27 = vadd.f32 %v1641_v24, %v1632_v18 }
 0x448   :  { %2429 = vmatpush3.msra.mxu1 %v1641_v24  ;;  %2439 = vmatprep.mubr.msk.f32.mxu0 %vm104_vm0, %v2722_v56 }
 0x449   :  { %2430 = vmatprep.subr.mxu1 %v1640_v25  ;;  %2435 = vmatprep.subr.mxu0 %v1793_v27  ;;  %v1792_v28 = vadd.f32 %v1640_v25, %v1631_v21 }
 0x44a   :  { %2431 = vmatpush3.msra.mxu1 %v1640_v25  ;;  %2436 = vmatpush3.msra.mxu0 %v1793_v27 }
 0x44b   :  { %2433 = vmatmul.mubr.msk.f32.vlgmr.msra.gmra.mxu1 %vm104_vm0, %v2727_v61  ;;  %2437 = vmatprep.subr.mxu0 %v1792_v28 }
 0x44c   :  { %2438 = vmatpush3.msra.mxu0 %v1792_v28  ;;  %2442 = vmatprep.subr.mxu1 %v2667_v0 }
 0x44d   :  { %2440 = vmatmul.mubr.msk.f32.vlgmr.msra.gmra.mxu0 %vm104_vm0, %v2733_v63  ;;  %2443 = vmatpush3.msra.mxu1 %v2667_v0 }
 0x44e   :  { %2444 = vmatprep.subr.mxu1 %v2671_v2  ;;  %2449 = vmatprep.subr.mxu0 %v2727_v61 }
 0x44f   :  { %2445 = vmatpush3.msra.mxu1 %v2671_v2  ;;  %2450 = vmatpush3.msra.mxu0 %v2727_v61 }
 0x450   :  { %2451 = vmatprep.subr.mxu0 %v2716_v26  ;;  %2456 = vmatprep.subr.mxu1 %v2733_v63 }
 0x451   :  { %2452 = vmatpush3.msra.mxu0 %v2716_v26 }
 0x507   :  { %v2427_v29 = vpop.f32.mrf.mxu0 }
 0x509   :  { %v1708_v30 = vpop.f32.mrf.mxu0 }
 0x50b   :  { %v2434_v31 = vpop.f32.mrf.mxu1 }
 0x50c   :  { %v1870_v35 = vsub.f32 %v2427_v29, %v2434_v31 }
 0x50d   :  { %v1783_v32 = vpop.f32.mrf.mxu1  ;;  %v2441_v33 = vpop.f32.mrf.mxu0 }
 0x50e   :  { %v1869_v0 = vsub.f32 %v1708_v30, %v1783_v32  ;;  %v1872_v34 = vsub.f32 %v2441_v33, %v2427_v29 }
 0x50f   :  { %v1860_v36 = vpop.f32.mrf.mxu0 }
 0x510   :  { %v1871_v37 = vsub.f32 %v1860_v36, %v1708_v30  ;;  %2446 = vmatprep.mubr.msk.f32.mxu1 %vm104_vm0, %v1869_v0  ;;  %v1874_v2 = vsub.f32 %v1872_v34, %v2434_v31 }
 0x511   :  { %2447 = vmatmul.mubr.msk.f32.vlgmr.msra.gmra.mxu1 %vm104_vm0, %v1870_v35 }
 0x512   :  { %v1873_v61 = vsub.f32 %v1871_v37, %v1783_v32  ;;  %2457 = vmatpush3.msra.mxu1 %v2733_v63  ;;  %v2038_v38 = vadd.f32 %v1874_v2, %v1870_v35 }
 0x513   :  { %2458 = vmatprep.subr.mxu1 %v2722_v56 }
 0x514   :  { %v2037_v26 = vadd.f32 %v1873_v61, %v1869_v0  ;;  %2453 = vmatprep.mubr.msk.f32.mxu0 %vm104_vm0, %v1873_v61  ;;  %2459 = vmatpush3.msra.mxu1 %v2722_v56 }
 0x515   :  { %2454 = vmatmul.mubr.msk.f32.vlgmr.msra.gmra.mxu0 %vm104_vm0, %v1874_v2 }
 0x516   :  { %2460 = vmatprep.mubr.msk.f32.mxu1 %vm104_vm0, %v2037_v26 }
 0x517   :  { %2461 = vmatmul.mubr.msk.f32.vlgmr.msra.gmra.mxu1 %vm104_vm0, %v2038_v38 }
 0x5d1   :  { %v2448_v39 = vpop.f32.mrf.mxu1 }
 0x5d3   :  { %v1947_v3 = vpop.f32.mrf.mxu1 }
 0x5d5   :  { %v2455_v40 = vpop.f32.mrf.mxu0 }
 0x5d6   :  { %v2121_v41 = vsub.f32 %v2448_v39, %v2455_v40 }
 0x5d7   :  { %v2028_v42 = vpop.f32.mrf.mxu0  ;;  %v2462_v63 = vpop.f32.mrf.mxu1 }
 0x5d8   :  { %2128 = vst.msk [vmem:[#allocation11 + $0x28] sm:$0xff] %vm104_vm0, %v2121_v41  ;;  %v2120_v43 = vsub.f32 %v1947_v3, %v2028_v42  ;;  %v2123_v44 = vsub.f32 %v2462_v63, %v2448_v39 }
 0x5d9   :  { %v2111_v45 = vpop.f32.mrf.mxu1 }
 0x5da   :  { %2127 = vst.msk [vmem:[#allocation11 + $0x20] sm:$0xff] %vm104_vm0, %v2120_v43  ;;  %v2125_v56 = vsub.f32 %v2123_v44, %v2455_v40  ;;  %v2122_v46 = vsub.f32 %v2111_v45, %v1947_v3 }
 0x5dc   :  { %2131 = vst.msk [vmem:[#allocation11 + $0x38] sm:$0xff] %vm104_vm0, %v2125_v56  ;;  %v2124_v47 = vsub.f32 %v2122_v46, %v2028_v42 }
 0x5de   :  { %2130 = vst.msk [vmem:[#allocation11 + $0x30] sm:$0xff] %vm104_vm0, %v2124_v47 }
 0x5df   :  { %2582 = shalt.err (!%p2579_p1)
}
 0x5e0   :  { %2143 = dma.vmem_to_hbm [thread:$0]  %s2138_s4, 1024, %s2836_s5, [#allocation4], %s2601_s23, %s2601_s23, %s2602_s24  }
 0x5e1   :  { %2597 = dma.done.wait [#allocation4], 1024  }
 0x5e2   :  { %2598 = vsyncadd [#allocation4], 4294966272 }
 0x5e3   :  { %2147 = vsyncpa [#allocation3], 1 }
 0x5e4   :  { %2148 = vsyncpa [#allocation6], 1 }
 0x5e5   :  { %2149 = vsyncpa [#allocation9], 1 }
 0x5e6   :  { %2150 = vsyncpa [#allocation4], 1 }

</bundles_post_ra>
